<compile_context>
chip_gen: v7x
topology: tpu7x:2x2x1
jax: 0.10.0
libtpu: 0.0.40
codegen_flags: <defaults>
</compile_context>

<pallas_src>
import math

import jax
import jax.numpy as jnp
from jax.experimental import pallas as pl
from jax.experimental.pallas import tpu as pltpu


def _add_kernel(a_ref, b_ref, o_ref):
    # Whole-tile elementwise add on the VPU.
    o_ref[...] = a_ref[...] + b_ref[...]


def _lane_dense_factorization(total):
    """Pick (rows, cols) = (small multiple of 8, long lane axis) that exactly
    factors `total`, so the slab is lane-dense (minimal masked lanes)."""
    for rows in (8, 16, 24, 32):
        if total % rows == 0:
            return rows, total // rows
    return None


# Keep (2 in + 1 out) slabs (x2 buffers in the tiled path) comfortably under
# the scoped-VMEM default on all generations.
_GRIDLESS_MAX_BYTES = 8 * 1024 * 1024  # total bytes across the 3 slabs


def pallas_add(x313, x327):
    assert x313.shape == x327.shape, "operands must share a shape"
    assert x313.dtype == x327.dtype, "operands must share a dtype"
    orig_shape = x313.shape
    total = x313.size
    itemsize = jnp.dtype(x313.dtype).itemsize

    fact = _lane_dense_factorization(total)
    if fact is not None:
        rows, cols = fact
    else:
        # Fallback: collapse leading dims, keep last dim on lanes.
        rows = math.prod(orig_shape[:-1]) if len(orig_shape) > 1 else 1
        cols = orig_shape[-1]

    a2d = x313.reshape(rows, cols)
    b2d = x327.reshape(rows, cols)

    total_bytes = 3 * total * itemsize

    if total_bytes <= _GRIDLESS_MAX_BYTES:
        # Tiny, memory-bound op: single whole-array VMEM block, no grid.
        out2d = pl.pallas_call(
            _add_kernel,
            out_shape=jax.ShapeDtypeStruct((rows, cols), x313.dtype),
            in_specs=[
                pl.BlockSpec(memory_space=pltpu.MemorySpace.VMEM),
                pl.BlockSpec(memory_space=pltpu.MemorySpace.VMEM),
            ],
            out_specs=pl.BlockSpec(memory_space=pltpu.MemorySpace.VMEM),
        )(a2d, b2d)
    else:
        # Larger instance: tile rows so block i+1 DMA overlaps block i compute,
        # and mark the axis "parallel" so both v7x TensorCores share the work.
        row_bytes = cols * itemsize
        budget = _GRIDLESS_MAX_BYTES
        # 3 slabs x 2 pipeline buffers per row-block; round down to sublane
        # multiple of 8 and clamp to [8, rows].
        block_rows = (budget // (6 * max(row_bytes, 1))) // 8 * 8
        block_rows = int(max(8, min(block_rows, rows)))
        grid = (pl.cdiv(rows, block_rows),)
        out2d = pl.pallas_call(
            _add_kernel,
            out_shape=jax.ShapeDtypeStruct((rows, cols), x313.dtype),
            grid=grid,
            in_specs=[
                pl.BlockSpec((block_rows, cols), lambda i: (i, 0)),
                pl.BlockSpec((block_rows, cols), lambda i: (i, 0)),
            ],
            out_specs=pl.BlockSpec((block_rows, cols), lambda i: (i, 0)),
            compiler_params=pltpu.CompilerParams(
                dimension_semantics=("parallel",)
            ),
        )(a2d, b2d)

    return out2d.reshape(orig_shape)


if __name__ == "__main__":
    key = jax.random.PRNGKey(0)
    k1, k2 = jax.random.split(key)

    # Shapes from the module: [1, 336, 14, 14]
    x313 = jax.random.normal(k1, (1, 336, 14, 14), dtype=jnp.float32)
    x327 = jax.random.normal(k2, (1, 336, 14, 14), dtype=jnp.float32)

    out = pallas_add(x313, x327)
    out = jax.block_until_ready(out)

    # Correctness check against plain JAX reference.
    ref = x313 + x327
    assert out.shape == (1, 336, 14, 14)
    assert out.dtype == ref.dtype
    assert jnp.allclose(out, ref, atol=1e-6), "mismatch vs reference add"

    print("KERNEL_OK")
</pallas_src>

<mosaic_0001>
module attributes {stable_mosaic.version = 11 : i64} {
  func.func @_add_kernel(%arg0: memref<8x8232xf32, #tpu.memory_space<vmem>>, %arg1: memref<8x8232xf32, #tpu.memory_space<vmem>>, %arg2: memref<8x8232xf32, #tpu.memory_space<vmem>>) attributes {dimension_semantics = [], scalar_prefetch = 0 : i64, scratch_operands = 0 : i64, tpu.core_type = #tpu.core_type<tc>} {
    %c0 = arith.constant 0 : index
    %c0_0 = arith.constant 0 : index
    %0 = vector.load %arg0[%c0, %c0_0] : memref<8x8232xf32, #tpu.memory_space<vmem>>, vector<8x8232xf32>
    %c0_1 = arith.constant 0 : index
    %c0_2 = arith.constant 0 : index
    %1 = vector.load %arg1[%c0_1, %c0_2] : memref<8x8232xf32, #tpu.memory_space<vmem>>, vector<8x8232xf32>
    %2 = arith.addf %0, %1 : vector<8x8232xf32>
    %c0_3 = arith.constant 0 : index
    %c0_4 = arith.constant 0 : index
    %3 = vector.load %arg2[%c0_3, %c0_4] : memref<8x8232xf32, #tpu.memory_space<vmem>>, vector<8x8232xf32>
    tpu.vector_store %arg2[%c0_3, %c0_4], %2 {strides = array<i32>} : memref<8x8232xf32, #tpu.memory_space<vmem>>, vector<8x8232xf32>,
    return
  }
}

</mosaic_0001>

<bundles_post_ra>
// kernel: tpu_custom_call.1
= control target key start
LH: loop header
LB: loop body
LE: loop exit
PB: predicated region body
PF: predicated region fallthrough
CT: control target
= control target key end

     0   :  { %7 = vsyncpa [#allocation3], 0  ;;  %s442_s0 = inlined_call_operand.hbm [shape: f32[8,8232], index: 0, kind: input, shape index: {}]   ;;  %s443_s1 = inlined_call_operand.hbm [shape: f32[8,8232], index: 1, kind: input, shape index: {}]   ;;  %s444_s2 = inlined_call_operand.hbm [shape: f32[8,8232], index: 2, kind: output, shape index: {}]  }
   0x1   :  { %8 = vsyncpa [#allocation6], 0 }
   0x2   :  { %9 = vsyncpa [#allocation4], 0  ;;  %s388_s9 = smov [#allocation2]   ;;  %s389_s11 = smov [#allocation5]  }
   0x3   :  { %s16_s10 = sshll.u32 %s388_s9, 4  ;;  %s26_s12 = sshll.u32 %s389_s11, 4  ;;  %s17_s10 = int_to_ptr.vmem [resolvable:$true] %s16_s10  ;;  %s27_s12 = int_to_ptr.vmem [resolvable:$true] %s26_s12 }
   0x4   :  { %s316_s15 = scalar_lea.hbm %s442_s0, 8320 }
   0x5   :  { %p317_p0 = scmp.ne.s32.totalorder %s442_s0, %s316_s15  ;;  %p320_p1 = scmp.lt.u32.totalorder %s316_s15, %s442_s0 }
   0x7   :  { %p322_p2 = pnand %p320_p1, %p317_p0 }
   0x9   :  { %325 = shalt.err (!%p322_p2)
}
   0xa   :  { %s326_s20 = scalar_lea.vmem %s17_s10, 8320  ;;  %p331_p4 = scmp.lt.s32.totalorder %s17_s10, %s17_s10 }
   0xb   :  { %p327_p3 = scmp.ne.s32.totalorder %s17_s10, %s326_s20  ;;  %p332_p5 = scmp.lt.s32.totalorder %s326_s20, %s326_s20 }
   0xd   :  { %p333_p6 = por %p332_p5, %p331_p4 }
   0xf   :  { %p334_p7 = pnand %p333_p6, %p327_p3 }
  0x11   :  { %337 = shalt.err (!%p334_p7)
}
  0x12   :  { %19 = dma.hbm_to_vmem [thread:$0]  %s442_s0, 8320, %s17_s10, [#allocation3]  }
  0x13   :  { %s338_s25 = scalar_lea.hbm %s443_s1, 8320 }
  0x14   :  { %p339_p8 = scmp.ne.s32.totalorder %s443_s1, %s338_s25  ;;  %p342_p9 = scmp.lt.u32.totalorder %s338_s25, %s443_s1 }
  0x16   :  { %p344_p10 = pnand %p342_p9, %p339_p8 }
  0x18   :  { %347 = shalt.err (!%p344_p10)
}
  0x19   :  { %s348_s30 = scalar_lea.vmem %s27_s12, 8320  ;;  %p353_p12 = scmp.lt.s32.totalorder %s27_s12, %s27_s12 }
  0x1a   :  { %p349_p11 = scmp.ne.s32.totalorder %s27_s12, %s348_s30  ;;  %p354_p13 = scmp.lt.s32.totalorder %s348_s30, %s348_s30 }
  0x1c   :  { %p355_p0 = por %p354_p13, %p353_p12 }
  0x1e   :  { %p356_p1 = pnand %p355_p0, %p349_p11 }
  0x20   :  { %359 = shalt.err (!%p356_p1)
}
  0x21   :  { %29 = dma.hbm_to_vmem [thread:$0]  %s443_s1, 8320, %s27_s12, [#allocation6]  }
  0x22   :  { %382 = dma.done.wait [#allocation3], 8320  }
  0x23   :  { %383 = vsyncadd [#allocation3], 4294958976 }
  0x24   :  { %384 = dma.done.wait [#allocation6], 8320  }
  0x25   :  { %385 = vsyncadd [#allocation6], 4294958976  ;;  %v36_v0 = vld [vmem:[#allocation2] sm:$0xff]  ;;  %v101_v1 = vld [vmem:[#allocation5] sm:$0xff]  ;;  %s390_s1 = smov [#allocation7]   ;;  %vm295_vm0 = vcmask 326656  }
  0x26   :  { %v37_v2 = vld [vmem:[#allocation2 + $0x8] sm:$0xff]  ;;  %v166_v3 = vadd.f32 %v101_v1, %v36_v0  ;;  %v102_v4 = vld [vmem:[#allocation5 + $0x8] sm:$0xff]  ;;  %v103_v6 = vld [vmem:[#allocation5 + $0x10] sm:$0xff]  ;;  %s303_s4 = sshll.u32 %s390_s1, 4  ;;  %s304_s4 = int_to_ptr.vmem [resolvable:$true] %s303_s4 }
  0x27   :  { %v38_v5 = vld [vmem:[#allocation2 + $0x10] sm:$0xff]  ;;  %v167_v7 = vadd.f32 %v102_v4, %v37_v2  ;;  %v39_v9 = vld [vmem:[#allocation2 + $0x18] sm:$0xff]  ;;  %v104_v10 = vld [vmem:[#allocation5 + $0x18] sm:$0xff]  ;;  %s360_s5 = scalar_lea.vmem %s304_s4, 8320  ;;  %p365_p3 = scmp.lt.s32.totalorder %s304_s4, %s304_s4 }
  0x28   :  { %v168_v8 = vadd.f32 %v103_v6, %v38_v5  ;;  %v40_v11 = vld [vmem:[#allocation2 + $0x20] sm:$0xff]  ;;  %231 = vst [vmem:[#allocation7] sm:$0xff] %v166_v3  ;;  %v169_v12 = vadd.f32 %v104_v10, %v39_v9  ;;  %v105_v13 = vld [vmem:[#allocation5 + $0x20] sm:$0xff]  ;;  %v106_v15 = vld [vmem:[#allocation5 + $0x28] sm:$0xff]  ;;  %p361_p2 = scmp.ne.s32.totalorder %s304_s4, %s360_s5  ;;  %p366_p4 = scmp.lt.s32.totalorder %s360_s5, %s360_s5 }
  0x29   :  { %v41_v14 = vld [vmem:[#allocation2 + $0x28] sm:$0xff]  ;;  %232 = vst [vmem:[#allocation7 + $0x8] sm:$0xff] %v167_v7  ;;  %v170_v16 = vadd.f32 %v105_v13, %v40_v11  ;;  %v42_v18 = vld [vmem:[#allocation2 + $0x30] sm:$0xff]  ;;  %v107_v19 = vld [vmem:[#allocation5 + $0x30] sm:$0xff] }
  0x2a   :  { %233 = vst [vmem:[#allocation7 + $0x10] sm:$0xff] %v168_v8  ;;  %v171_v17 = vadd.f32 %v106_v15, %v41_v14  ;;  %v43_v20 = vld [vmem:[#allocation2 + $0x38] sm:$0xff]  ;;  %234 = vst [vmem:[#allocation7 + $0x18] sm:$0xff] %v169_v12  ;;  %v172_v21 = vadd.f32 %v107_v19, %v42_v18  ;;  %v108_v22 = vld [vmem:[#allocation5 + $0x38] sm:$0xff]  ;;  %p367_p5 = por %p366_p4, %p365_p3 }
  0x2b   :  { %v44_v23 = vld [vmem:[#allocation2 + $0x40] sm:$0xff]  ;;  %v109_v24 = vld [vmem:[#allocation5 + $0x40] sm:$0xff]  ;;  %235 = vst [vmem:[#allocation7 + $0x20] sm:$0xff] %v170_v16  ;;  %v173_v25 = vadd.f32 %v108_v22, %v43_v20  ;;  %v110_v28 = vld [vmem:[#allocation5 + $0x48] sm:$0xff] }
  0x2c   :  { %236 = vst [vmem:[#allocation7 + $0x28] sm:$0xff] %v171_v17  ;;  %v174_v26 = vadd.f32 %v109_v24, %v44_v23  ;;  %v45_v27 = vld [vmem:[#allocation2 + $0x48] sm:$0xff]  ;;  %v46_v29 = vld [vmem:[#allocation2 + $0x50] sm:$0xff]  ;;  %237 = vst [vmem:[#allocation7 + $0x30] sm:$0xff] %v172_v21  ;;  %p368_p6 = pnand %p367_p5, %p361_p2 }
  0x2d   :  { %v175_v30 = vadd.f32 %v110_v28, %v45_v27  ;;  %v111_v31 = vld [vmem:[#allocation5 + $0x50] sm:$0xff]  ;;  %v112_v33 = vld [vmem:[#allocation5 + $0x58] sm:$0xff]  ;;  %238 = vst [vmem:[#allocation7 + $0x38] sm:$0xff] %v173_v25  ;;  %v113_v37 = vld [vmem:[#allocation5 + $0x60] sm:$0xff] }
  0x2e   :  { %v47_v32 = vld [vmem:[#allocation2 + $0x58] sm:$0xff]  ;;  %239 = vst [vmem:[#allocation7 + $0x40] sm:$0xff] %v174_v26  ;;  %v176_v34 = vadd.f32 %v111_v31, %v46_v29  ;;  %v48_v36 = vld [vmem:[#allocation2 + $0x60] sm:$0xff]  ;;  %v49_v38 = vld [vmem:[#allocation2 + $0x68] sm:$0xff] }
  0x2f   :  { %v177_v35 = vadd.f32 %v112_v33, %v47_v32  ;;  %240 = vst [vmem:[#allocation7 + $0x48] sm:$0xff] %v175_v30  ;;  %v178_v39 = vadd.f32 %v113_v37, %v48_v36  ;;  %v114_v40 = vld [vmem:[#allocation5 + $0x68] sm:$0xff]  ;;  %v115_v42 = vld [vmem:[#allocation5 + $0x70] sm:$0xff]  ;;  %v116_v46 = vld [vmem:[#allocation5 + $0x78] sm:$0xff] }
  0x30   :  { %v50_v41 = vld [vmem:[#allocation2 + $0x70] sm:$0xff]  ;;  %241 = vst [vmem:[#allocation7 + $0x50] sm:$0xff] %v176_v34  ;;  %v179_v43 = vadd.f32 %v114_v40, %v49_v38  ;;  %v51_v45 = vld [vmem:[#allocation2 + $0x78] sm:$0xff]  ;;  %v52_v47 = vld [vmem:[#allocation2 + $0x80] sm:$0xff] }
  0x31   :  { %242 = vst [vmem:[#allocation7 + $0x58] sm:$0xff] %v177_v35  ;;  %v180_v44 = vadd.f32 %v115_v42, %v50_v41  ;;  %243 = vst [vmem:[#allocation7 + $0x60] sm:$0xff] %v178_v39  ;;  %v181_v48 = vadd.f32 %v116_v46, %v51_v45  ;;  %v117_v49 = vld [vmem:[#allocation5 + $0x80] sm:$0xff]  ;;  %v118_v51 = vld [vmem:[#allocation5 + $0x88] sm:$0xff] }
  0x32   :  { %v53_v50 = vld [vmem:[#allocation2 + $0x88] sm:$0xff]  ;;  %244 = vst [vmem:[#allocation7 + $0x68] sm:$0xff] %v179_v43  ;;  %v182_v52 = vadd.f32 %v117_v49, %v52_v47  ;;  %v54_v54 = vld [vmem:[#allocation2 + $0x90] sm:$0xff]  ;;  %v119_v55 = vld [vmem:[#allocation5 + $0x90] sm:$0xff] }
  0x33   :  { %245 = vst [vmem:[#allocation7 + $0x70] sm:$0xff] %v180_v44  ;;  %v183_v53 = vadd.f32 %v118_v51, %v53_v50  ;;  %v55_v56 = vld [vmem:[#allocation2 + $0x98] sm:$0xff]  ;;  %246 = vst [vmem:[#allocation7 + $0x78] sm:$0xff] %v181_v48  ;;  %v184_v57 = vadd.f32 %v119_v55, %v54_v54  ;;  %v120_v58 = vld [vmem:[#allocation5 + $0x98] sm:$0xff] }
  0x34   :  { %v56_v59 = vld [vmem:[#allocation2 + $0xa0] sm:$0xff]  ;;  %v121_v60 = vld [vmem:[#allocation5 + $0xa0] sm:$0xff]  ;;  %247 = vst [vmem:[#allocation7 + $0x80] sm:$0xff] %v182_v52  ;;  %v185_v61 = vadd.f32 %v120_v58, %v55_v56  ;;  %v122_v0 = vld [vmem:[#allocation5 + $0xa8] sm:$0xff] }
  0x35   :  { %248 = vst [vmem:[#allocation7 + $0x88] sm:$0xff] %v183_v53  ;;  %v186_v62 = vadd.f32 %v121_v60, %v56_v59  ;;  %v57_v63 = vld [vmem:[#allocation2 + $0xa8] sm:$0xff]  ;;  %v58_v1 = vld [vmem:[#allocation2 + $0xb0] sm:$0xff]  ;;  %249 = vst [vmem:[#allocation7 + $0x90] sm:$0xff] %v184_v57 }
  0x36   :  { %v187_v2 = vadd.f32 %v122_v0, %v57_v63  ;;  %v123_v3 = vld [vmem:[#allocation5 + $0xb0] sm:$0xff]  ;;  %v124_v5 = vld [vmem:[#allocation5 + $0xb8] sm:$0xff]  ;;  %250 = vst [vmem:[#allocation7 + $0x98] sm:$0xff] %v185_v61  ;;  %v125_v9 = vld [vmem:[#allocation5 + $0xc0] sm:$0xff] }
  0x37   :  { %v59_v4 = vld [vmem:[#allocation2 + $0xb8] sm:$0xff]  ;;  %251 = vst [vmem:[#allocation7 + $0xa0] sm:$0xff] %v186_v62  ;;  %v188_v6 = vadd.f32 %v123_v3, %v58_v1  ;;  %v60_v8 = vld [vmem:[#allocation2 + $0xc0] sm:$0xff]  ;;  %v61_v10 = vld [vmem:[#allocation2 + $0xc8] sm:$0xff] }
  0x38   :  { %v189_v7 = vadd.f32 %v124_v5, %v59_v4  ;;  %252 = vst [vmem:[#allocation7 + $0xa8] sm:$0xff] %v187_v2  ;;  %v190_v11 = vadd.f32 %v125_v9, %v60_v8  ;;  %v126_v12 = vld [vmem:[#allocation5 + $0xc8] sm:$0xff]  ;;  %v127_v14 = vld [vmem:[#allocation5 + $0xd0] sm:$0xff]  ;;  %v128_v18 = vld [vmem:[#allocation5 + $0xd8] sm:$0xff] }
  0x39   :  { %v62_v13 = vld [vmem:[#allocation2 + $0xd0] sm:$0xff]  ;;  %253 = vst [vmem:[#allocation7 + $0xb0] sm:$0xff] %v188_v6  ;;  %v191_v15 = vadd.f32 %v126_v12, %v61_v10  ;;  %v63_v17 = vld [vmem:[#allocation2 + $0xd8] sm:$0xff]  ;;  %v64_v19 = vld [vmem:[#allocation2 + $0xe0] sm:$0xff] }
  0x3a   :  { %254 = vst [vmem:[#allocation7 + $0xb8] sm:$0xff] %v189_v7  ;;  %v192_v16 = vadd.f32 %v127_v14, %v62_v13  ;;  %255 = vst [vmem:[#allocation7 + $0xc0] sm:$0xff] %v190_v11  ;;  %v193_v20 = vadd.f32 %v128_v18, %v63_v17  ;;  %v129_v21 = vld [vmem:[#allocation5 + $0xe0] sm:$0xff]  ;;  %v130_v23 = vld [vmem:[#allocation5 + $0xe8] sm:$0xff] }
  0x3b   :  { %v65_v22 = vld [vmem:[#allocation2 + $0xe8] sm:$0xff]  ;;  %256 = vst [vmem:[#allocation7 + $0xc8] sm:$0xff] %v191_v15  ;;  %v194_v24 = vadd.f32 %v129_v21, %v64_v19  ;;  %v66_v26 = vld [vmem:[#allocation2 + $0xf0] sm:$0xff]  ;;  %v131_v27 = vld [vmem:[#allocation5 + $0xf0] sm:$0xff] }
  0x3c   :  { %257 = vst [vmem:[#allocation7 + $0xd0] sm:$0xff] %v192_v16  ;;  %v195_v25 = vadd.f32 %v130_v23, %v65_v22  ;;  %v67_v28 = vld [vmem:[#allocation2 + $0xf8] sm:$0xff]  ;;  %258 = vst [vmem:[#allocation7 + $0xd8] sm:$0xff] %v193_v20  ;;  %v196_v29 = vadd.f32 %v131_v27, %v66_v26  ;;  %v132_v30 = vld [vmem:[#allocation5 + $0xf8] sm:$0xff] }
  0x3d   :  { %v68_v31 = vld [vmem:[#allocation2 + $0x100] sm:$0xff]  ;;  %v133_v32 = vld [vmem:[#allocation5 + $0x100] sm:$0xff]  ;;  %259 = vst [vmem:[#allocation7 + $0xe0] sm:$0xff] %v194_v24  ;;  %v197_v33 = vadd.f32 %v132_v30, %v67_v28  ;;  %v134_v36 = vld [vmem:[#allocation5 + $0x108] sm:$0xff] }
  0x3e   :  { %260 = vst [vmem:[#allocation7 + $0xe8] sm:$0xff] %v195_v25  ;;  %v198_v34 = vadd.f32 %v133_v32, %v68_v31  ;;  %v69_v35 = vld [vmem:[#allocation2 + $0x108] sm:$0xff]  ;;  %v70_v37 = vld [vmem:[#allocation2 + $0x110] sm:$0xff]  ;;  %261 = vst [vmem:[#allocation7 + $0xf0] sm:$0xff] %v196_v29 }
  0x3f   :  { %v199_v38 = vadd.f32 %v134_v36, %v69_v35  ;;  %v135_v39 = vld [vmem:[#allocation5 + $0x110] sm:$0xff]  ;;  %v136_v41 = vld [vmem:[#allocation5 + $0x118] sm:$0xff]  ;;  %262 = vst [vmem:[#allocation7 + $0xf8] sm:$0xff] %v197_v33  ;;  %v137_v45 = vld [vmem:[#allocation5 + $0x120] sm:$0xff] }
  0x40   :  { %v71_v40 = vld [vmem:[#allocation2 + $0x118] sm:$0xff]  ;;  %263 = vst [vmem:[#allocation7 + $0x100] sm:$0xff] %v198_v34  ;;  %v200_v42 = vadd.f32 %v135_v39, %v70_v37  ;;  %v72_v44 = vld [vmem:[#allocation2 + $0x120] sm:$0xff]  ;;  %v73_v46 = vld [vmem:[#allocation2 + $0x128] sm:$0xff] }
  0x41   :  { %v201_v43 = vadd.f32 %v136_v41, %v71_v40  ;;  %264 = vst [vmem:[#allocation7 + $0x108] sm:$0xff] %v199_v38  ;;  %v202_v47 = vadd.f32 %v137_v45, %v72_v44  ;;  %v138_v48 = vld [vmem:[#allocation5 + $0x128] sm:$0xff]  ;;  %v139_v50 = vld [vmem:[#allocation5 + $0x130] sm:$0xff]  ;;  %v140_v54 = vld [vmem:[#allocation5 + $0x138] sm:$0xff] }
  0x42   :  { %v74_v49 = vld [vmem:[#allocation2 + $0x130] sm:$0xff]  ;;  %265 = vst [vmem:[#allocation7 + $0x110] sm:$0xff] %v200_v42  ;;  %v203_v51 = vadd.f32 %v138_v48, %v73_v46  ;;  %v75_v53 = vld [vmem:[#allocation2 + $0x138] sm:$0xff]  ;;  %v76_v55 = vld [vmem:[#allocation2 + $0x140] sm:$0xff] }
  0x43   :  { %266 = vst [vmem:[#allocation7 + $0x118] sm:$0xff] %v201_v43  ;;  %v204_v52 = vadd.f32 %v139_v50, %v74_v49  ;;  %267 = vst [vmem:[#allocation7 + $0x120] sm:$0xff] %v202_v47  ;;  %v205_v56 = vadd.f32 %v140_v54, %v75_v53  ;;  %v141_v57 = vld [vmem:[#allocation5 + $0x140] sm:$0xff]  ;;  %v142_v59 = vld [vmem:[#allocation5 + $0x148] sm:$0xff] }
  0x44   :  { %v77_v58 = vld [vmem:[#allocation2 + $0x148] sm:$0xff]  ;;  %268 = vst [vmem:[#allocation7 + $0x128] sm:$0xff] %v203_v51  ;;  %v206_v60 = vadd.f32 %v141_v57, %v76_v55  ;;  %v78_v62 = vld [vmem:[#allocation2 + $0x150] sm:$0xff]  ;;  %v143_v63 = vld [vmem:[#allocation5 + $0x150] sm:$0xff] }
  0x45   :  { %269 = vst [vmem:[#allocation7 + $0x130] sm:$0xff] %v204_v52  ;;  %v207_v61 = vadd.f32 %v142_v59, %v77_v58  ;;  %v79_v0 = vld [vmem:[#allocation2 + $0x158] sm:$0xff]  ;;  %270 = vst [vmem:[#allocation7 + $0x138] sm:$0xff] %v205_v56  ;;  %v208_v1 = vadd.f32 %v143_v63, %v78_v62  ;;  %v144_v2 = vld [vmem:[#allocation5 + $0x158] sm:$0xff] }
  0x46   :  { %v80_v3 = vld [vmem:[#allocation2 + $0x160] sm:$0xff]  ;;  %v145_v4 = vld [vmem:[#allocation5 + $0x160] sm:$0xff]  ;;  %271 = vst [vmem:[#allocation7 + $0x140] sm:$0xff] %v206_v60  ;;  %v209_v5 = vadd.f32 %v144_v2, %v79_v0  ;;  %v146_v8 = vld [vmem:[#allocation5 + $0x168] sm:$0xff] }
  0x47   :  { %272 = vst [vmem:[#allocation7 + $0x148] sm:$0xff] %v207_v61  ;;  %v210_v6 = vadd.f32 %v145_v4, %v80_v3  ;;  %v81_v7 = vld [vmem:[#allocation2 + $0x168] sm:$0xff]  ;;  %v82_v9 = vld [vmem:[#allocation2 + $0x170] sm:$0xff]  ;;  %273 = vst [vmem:[#allocation7 + $0x150] sm:$0xff] %v208_v1 }
  0x48   :  { %v211_v10 = vadd.f32 %v146_v8, %v81_v7  ;;  %v147_v11 = vld [vmem:[#allocation5 + $0x170] sm:$0xff]  ;;  %v148_v13 = vld [vmem:[#allocation5 + $0x178] sm:$0xff]  ;;  %274 = vst [vmem:[#allocation7 + $0x158] sm:$0xff] %v209_v5  ;;  %v149_v17 = vld [vmem:[#allocation5 + $0x180] sm:$0xff] }
  0x49   :  { %v83_v12 = vld [vmem:[#allocation2 + $0x178] sm:$0xff]  ;;  %275 = vst [vmem:[#allocation7 + $0x160] sm:$0xff] %v210_v6  ;;  %v212_v14 = vadd.f32 %v147_v11, %v82_v9  ;;  %v84_v16 = vld [vmem:[#allocation2 + $0x180] sm:$0xff]  ;;  %v85_v18 = vld [vmem:[#allocation2 + $0x188] sm:$0xff] }
  0x4a   :  { %v213_v15 = vadd.f32 %v148_v13, %v83_v12  ;;  %276 = vst [vmem:[#allocation7 + $0x168] sm:$0xff] %v211_v10  ;;  %v214_v19 = vadd.f32 %v149_v17, %v84_v16  ;;  %v150_v20 = vld [vmem:[#allocation5 + $0x188] sm:$0xff]  ;;  %v151_v22 = vld [vmem:[#allocation5 + $0x190] sm:$0xff]  ;;  %v152_v26 = vld [vmem:[#allocation5 + $0x198] sm:$0xff] }
  0x4b   :  { %v86_v21 = vld [vmem:[#allocation2 + $0x190] sm:$0xff]  ;;  %277 = vst [vmem:[#allocation7 + $0x170] sm:$0xff] %v212_v14  ;;  %v215_v23 = vadd.f32 %v150_v20, %v85_v18  ;;  %v87_v25 = vld [vmem:[#allocation2 + $0x198] sm:$0xff]  ;;  %v88_v27 = vld [vmem:[#allocation2 + $0x1a0] sm:$0xff] }
  0x4c   :  { %278 = vst [vmem:[#allocation7 + $0x178] sm:$0xff] %v213_v15  ;;  %v216_v24 = vadd.f32 %v151_v22, %v86_v21  ;;  %279 = vst [vmem:[#allocation7 + $0x180] sm:$0xff] %v214_v19  ;;  %v217_v28 = vadd.f32 %v152_v26, %v87_v25  ;;  %v153_v29 = vld [vmem:[#allocation5 + $0x1a0] sm:$0xff]  ;;  %v154_v31 = vld [vmem:[#allocation5 + $0x1a8] sm:$0xff] }
  0x4d   :  { %v89_v30 = vld [vmem:[#allocation2 + $0x1a8] sm:$0xff]  ;;  %280 = vst [vmem:[#allocation7 + $0x188] sm:$0xff] %v215_v23  ;;  %v218_v32 = vadd.f32 %v153_v29, %v88_v27  ;;  %v90_v34 = vld [vmem:[#allocation2 + $0x1b0] sm:$0xff]  ;;  %v155_v35 = vld [vmem:[#allocation5 + $0x1b0] sm:$0xff] }
  0x4e   :  { %281 = vst [vmem:[#allocation7 + $0x190] sm:$0xff] %v216_v24  ;;  %v219_v33 = vadd.f32 %v154_v31, %v89_v30  ;;  %v91_v36 = vld [vmem:[#allocation2 + $0x1b8] sm:$0xff]  ;;  %282 = vst [vmem:[#allocation7 + $0x198] sm:$0xff] %v217_v28  ;;  %v220_v37 = vadd.f32 %v155_v35, %v90_v34  ;;  %v156_v38 = vld [vmem:[#allocation5 + $0x1b8] sm:$0xff] }
  0x4f   :  { %v92_v39 = vld [vmem:[#allocation2 + $0x1c0] sm:$0xff]  ;;  %v157_v40 = vld [vmem:[#allocation5 + $0x1c0] sm:$0xff]  ;;  %283 = vst [vmem:[#allocation7 + $0x1a0] sm:$0xff] %v218_v32  ;;  %v221_v41 = vadd.f32 %v156_v38, %v91_v36  ;;  %v158_v44 = vld [vmem:[#allocation5 + $0x1c8] sm:$0xff] }
  0x50   :  { %284 = vst [vmem:[#allocation7 + $0x1a8] sm:$0xff] %v219_v33  ;;  %v222_v42 = vadd.f32 %v157_v40, %v92_v39  ;;  %v93_v43 = vld [vmem:[#allocation2 + $0x1c8] sm:$0xff]  ;;  %v94_v45 = vld [vmem:[#allocation2 + $0x1d0] sm:$0xff]  ;;  %285 = vst [vmem:[#allocation7 + $0x1b0] sm:$0xff] %v220_v37 }
  0x51   :  { %v223_v46 = vadd.f32 %v158_v44, %v93_v43  ;;  %v159_v47 = vld [vmem:[#allocation5 + $0x1d0] sm:$0xff]  ;;  %v160_v49 = vld [vmem:[#allocation5 + $0x1d8] sm:$0xff]  ;;  %286 = vst [vmem:[#allocation7 + $0x1b8] sm:$0xff] %v221_v41  ;;  %v161_v53 = vld [vmem:[#allocation5 + $0x1e0] sm:$0xff] }
  0x52   :  { %v95_v48 = vld [vmem:[#allocation2 + $0x1d8] sm:$0xff]  ;;  %287 = vst [vmem:[#allocation7 + $0x1c0] sm:$0xff] %v222_v42  ;;  %v224_v50 = vadd.f32 %v159_v47, %v94_v45  ;;  %v96_v52 = vld [vmem:[#allocation2 + $0x1e0] sm:$0xff]  ;;  %v97_v54 = vld [vmem:[#allocation2 + $0x1e8] sm:$0xff] }
  0x53   :  { %v225_v51 = vadd.f32 %v160_v49, %v95_v48  ;;  %288 = vst [vmem:[#allocation7 + $0x1c8] sm:$0xff] %v223_v46  ;;  %v226_v55 = vadd.f32 %v161_v53, %v96_v52  ;;  %v162_v56 = vld [vmem:[#allocation5 + $0x1e8] sm:$0xff]  ;;  %v163_v58 = vld [vmem:[#allocation5 + $0x1f0] sm:$0xff]  ;;  %v164_v62 = vld [vmem:[#allocation5 + $0x1f8] sm:$0xff] }
  0x54   :  { %v98_v57 = vld [vmem:[#allocation2 + $0x1f0] sm:$0xff]  ;;  %289 = vst [vmem:[#allocation7 + $0x1d0] sm:$0xff] %v224_v50  ;;  %v227_v59 = vadd.f32 %v162_v56, %v97_v54  ;;  %v99_v61 = vld [vmem:[#allocation2 + $0x1f8] sm:$0xff]  ;;  %v100_v63 = vld [vmem:[#allocation2 + $0x200] sm:$0xff] }
  0x55   :  { %290 = vst [vmem:[#allocation7 + $0x1d8] sm:$0xff] %v225_v51  ;;  %v228_v60 = vadd.f32 %v163_v58, %v98_v57  ;;  %291 = vst [vmem:[#allocation7 + $0x1e0] sm:$0xff] %v226_v55  ;;  %v229_v0 = vadd.f32 %v164_v62, %v99_v61  ;;  %v165_v1 = vld [vmem:[#allocation5 + $0x200] sm:$0xff] }
  0x56   :  { %292 = vst [vmem:[#allocation7 + $0x1e8] sm:$0xff] %v227_v59  ;;  %v230_v2 = vadd.f32 %v165_v1, %v100_v63 }
  0x57   :  { %293 = vst [vmem:[#allocation7 + $0x1f0] sm:$0xff] %v228_v60  ;;  %294 = vst [vmem:[#allocation7 + $0x1f8] sm:$0xff] %v229_v0 }
  0x58   :  { %296 = vst.msk [vmem:[#allocation7 + $0x200] sm:$0xff] %vm295_vm0, %v230_v2 }
  0x59   :  { %371 = shalt.err (!%p368_p6)
}
  0x5a   :  { %s372_s8 = scalar_lea.hbm %s444_s2, 8320 }
  0x5b   :  { %p373_p7 = scmp.ne.s32.totalorder %s444_s2, %s372_s8  ;;  %p376_p8 = scmp.lt.u32.totalorder %s372_s8, %s444_s2 }
  0x5d   :  { %p378_p9 = pnand %p376_p8, %p373_p7 }
  0x5f   :  { %381 = shalt.err (!%p378_p9)
}
  0x60   :  { %306 = dma.vmem_to_hbm [thread:$0]  %s304_s4, 8320, %s444_s2, [#allocation4]  }
  0x61   :  { %386 = dma.done.wait [#allocation4], 8320  }
  0x62   :  { %387 = vsyncadd [#allocation4], 4294958976 }
  0x63   :  { %310 = vsyncpa [#allocation3], 1 }
  0x64   :  { %311 = vsyncpa [#allocation6], 1 }
  0x65   :  { %312 = vsyncpa [#allocation4], 1 }

</bundles_post_ra>
